<compile_context>
chip_gen: v5e
topology: v5e:2x2
jax: 0.10.0
libtpu: 0.0.40
codegen_flags: <defaults>
</compile_context>

<pallas_src>
import functools

import jax
import jax.numpy as jnp
from jax import lax
from jax.experimental import pallas as pl
from jax.experimental.pallas import tpu as pltpu


def _compiler_params(**kwargs):
    cls = getattr(pltpu, "CompilerParams", None)
    if cls is None:  # older JAX naming
        cls = getattr(pltpu, "TPUCompilerParams")
    return cls(**kwargs)


# ---------------- Kernel A: BN apply + leaky_relu + zero-pad scatter ----------------

def _bn_act_pad_kernel(x_ref, scale_ref, shift_ref, o_ref, *, H, W):
    # x_ref:           (C, H, W)      one depth slice of x (NCDHW read directly)
    # scale/shift_ref: (C, 1, 1)      per-channel BN scale / shift
    # o_ref:           (C, H+2, W+2)  zero-padded, activated output slab
    dp = pl.program_id(1)
    o_ref[...] = jnp.zeros_like(o_ref)  # borders (and full depth-pad slabs) are zero

    @pl.when((dp > 0) & (dp < pl.num_programs(1) - 1))
    def _():
        y = x_ref[...] * scale_ref[...] + shift_ref[...]
        y = jnp.where(y >= 0, y, 0.01 * y)  # leaky_relu(0.01)
        o_ref[:, 1:H + 1, 1:W + 1] = y


def _bn_act_pad(x, scale, shift):
    N, C, D, H, W = x.shape
    Dp, Hp, Wp = D + 2, H + 2, W + 2
    kernel = functools.partial(_bn_act_pad_kernel, H=H, W=W)
    return pl.pallas_call(
        kernel,
        out_shape=jax.ShapeDtypeStruct((N, Dp, C, Hp, Wp), x.dtype),
        grid=(N, Dp),
        in_specs=[
            # read x[n, :, dp-1, :, :] (clamped; ignored for the pad slabs)
            pl.BlockSpec((None, C, None, H, W),
                         lambda n, dp: (n, 0, jnp.clip(dp - 1, 0, D - 1), 0, 0)),
            pl.BlockSpec((C, 1, 1), lambda n, dp: (0, 0, 0)),
            pl.BlockSpec((C, 1, 1), lambda n, dp: (0, 0, 0)),
        ],
        out_specs=pl.BlockSpec((None, None, C, Hp, Wp),
                               lambda n, dp: (n, dp, 0, 0, 0)),
        compiler_params=_compiler_params(
            dimension_semantics=("parallel", "parallel")),
    )(x, scale.reshape(C, 1, 1), shift.reshape(C, 1, 1))


# ---------------- Kernel B: fused im2col (in VMEM) + conv matmul ----------------

def _conv3d_kernel(s0_ref, s1_ref, s2_ref, w_ref, b_ref, o_ref, sext_ref, *, Wp):
    # s*_ref:   (Cin, Lp)  zero-padded activated depth slabs dp = d, d+1, d+2,
    #                      flattened over (H+2, W+2); Lp = (H+2)*(W+2)
    # w_ref:    (27, Cout, Cin)   tap = kd*9 + kh*3 + kw
    # b_ref:    (Cout, 1)
    # o_ref:    (Cout, Lp)        conv output in padded spatial coords
    # sext_ref: (Cin, Lp + 2*M)   VMEM staging with zero lane margins, M = Wp + 1
    Cout, Lp = o_ref.shape
    M = Wp + 1

    w = w_ref[...]
    acc = jnp.broadcast_to(b_ref[...], (Cout, Lp)).astype(jnp.float32)

    sext_ref[...] = jnp.zeros_like(sext_ref)  # keep lane margins at zero
    slab_refs = (s0_ref, s1_ref, s2_ref)
    for kd in range(3):
        sext_ref[:, M:M + Lp] = slab_refs[kd][...]
        for kh in range(3):
            for kw in range(3):
                tap = kd * 9 + kh * 3 + kw
                start = M + (kh - 1) * Wp + (kw - 1)
                window = sext_ref[:, start:start + Lp]        # shifted tap view
                acc = acc + jnp.dot(w[tap], window,
                                    preferred_element_type=jnp.float32)
    o_ref[...] = acc.astype(o_ref.dtype)


def _conv3d_padded(yp, w27, bias, D):
    # yp: (N, Dp, C, Hp, Wp) zero-padded activations from kernel A.
    N, Dp, C, Hp, Wp = yp.shape
    Lp = Hp * Wp
    Cout = w27.shape[1]
    yp_flat = yp.reshape(N, Dp, C, Lp)  # contiguous -> free reshape

    def slab_spec(k):
        return pl.BlockSpec((None, None, C, Lp),
                            lambda n, d, k=k: (n, d + k, 0, 0))

    kernel = functools.partial(_conv3d_kernel, Wp=Wp)
    return pl.pallas_call(
        kernel,
        out_shape=jax.ShapeDtypeStruct((N, D, Cout, Lp), yp.dtype),
        grid=(N, D),
        in_specs=[
            slab_spec(0), slab_spec(1), slab_spec(2),
            pl.BlockSpec((27, Cout, C), lambda n, d: (0, 0, 0)),
            pl.BlockSpec((Cout, 1), lambda n, d: (0, 0)),
        ],
        out_specs=pl.BlockSpec((None, None, Cout, Lp),
                               lambda n, d: (n, d, 0, 0)),
        scratch_shapes=[pltpu.VMEM((C, Lp + 2 * (Wp + 1)), yp.dtype)],
        compiler_params=_compiler_params(
            dimension_semantics=("parallel", "parallel")),
    )(yp_flat, yp_flat, yp_flat, w27, bias.reshape(Cout, 1))


# ---------------- forward ----------------

def single_layer_bn_forward(x, gamma, beta, conv_w, conv_b, eps=1e-5):
    """x: (N, Cin, D, H, W). Returns (N, Cin + Cout, D, H, W)."""
    N, C, D, H, W = x.shape
    Cout = conv_w.shape[0]

    # Training-mode batch statistics (biased variance), one fused XLA pass over x.
    # TODO(synk): fold the per-channel sum/sumsq reduction into the Pallas BN kernel.
    mean = jnp.mean(x, axis=(0, 2, 3, 4))
    var = jnp.var(x, axis=(0, 2, 3, 4))
    scale = gamma / jnp.sqrt(var + eps)
    shift = beta - mean * scale

    yp = _bn_act_pad(x, scale, shift)  # (N, D+2, C, H+2, W+2), zero-padded

    # torch weight (Cout, Cin, kd, kh, kw) -> (27, Cout, Cin), tap = kd*9 + kh*3 + kw
    w27 = jnp.transpose(conv_w, (2, 3, 4, 0, 1)).reshape(27, Cout, C)
    out_flat = _conv3d_padded(yp, w27, conv_b, D)  # (N, D, Cout, (H+2)*(W+2))

    # Extract interior, go back to NCDHW, concat with the original input.
    # TODO(synk): write the conv result directly into the channel-concat slice
    #             (input_output_aliases) to drop this final copy/concat pass.
    out = out_flat.reshape(N, D, Cout, H + 2, W + 2)[:, :, :, 1:H + 1, 1:W + 1]
    out = jnp.transpose(out, (0, 2, 1, 3, 4))  # (N, Cout, D, H, W)
    return jnp.concatenate([x, out], axis=1)


# ---------------- reference (for self-check) ----------------

def _reference_forward(x, gamma, beta, conv_w, conv_b, eps=1e-5):
    mean = jnp.mean(x, axis=(0, 2, 3, 4), keepdims=True)
    var = jnp.var(x, axis=(0, 2, 3, 4), keepdims=True)
    y = (x - mean) / jnp.sqrt(var + eps) * gamma.reshape(1, -1, 1, 1, 1) \
        + beta.reshape(1, -1, 1, 1, 1)
    y = jnp.where(y >= 0, y, 0.01 * y)
    out = lax.conv_general_dilated(
        y, conv_w, window_strides=(1, 1, 1), padding=[(1, 1)] * 3,
        dimension_numbers=("NCDHW", "OIDHW", "NCDHW"))
    out = out + conv_b.reshape(1, -1, 1, 1, 1)
    return jnp.concatenate([x, out], axis=1)


if __name__ == "__main__":
    key = jax.random.PRNGKey(0)
    k_x, k_g, k_b, k_w, k_c = jax.random.split(key, 5)

    N, Cin, Cout, D, H, W = 2, 4, 4, 4, 8, 8

    x = jax.random.normal(k_x, (N, Cin, D, H, W), dtype=jnp.float32)
    gamma = 1.0 + 0.1 * jax.random.normal(k_g, (Cin,), dtype=jnp.float32)
    beta = 0.1 * jax.random.normal(k_b, (Cin,), dtype=jnp.float32)
    conv_w = 0.1 * jax.random.normal(k_w, (Cout, Cin, 3, 3, 3), dtype=jnp.float32)
    conv_b = 0.05 * jax.random.normal(k_c, (Cout,), dtype=jnp.float32)

    fwd = jax.jit(single_layer_bn_forward)
    out = jax.block_until_ready(fwd(x, gamma, beta, conv_w, conv_b))

    ref = jax.block_until_ready(_reference_forward(x, gamma, beta, conv_w, conv_b))
    assert out.shape == (N, Cin + Cout, D, H, W), out.shape
    err = float(jnp.max(jnp.abs(out - ref)))
    assert jnp.allclose(out, ref, atol=1e-4, rtol=1e-4), err

    print("KERNEL_OK")
</pallas_src>

<mosaic_0001>
module attributes {stable_mosaic.version = 11 : i64} {
  func.func @_bn_act_pad_kernel(%arg0: i32, %arg1: i32, %arg2: memref<1x4x1x8x8xf32, #tpu.memory_space<vmem>>, %arg3: memref<4x1x1xf32, #tpu.memory_space<vmem>>, %arg4: memref<4x1x1xf32, #tpu.memory_space<vmem>>, %arg5: memref<1x1x4x10x10xf32, #tpu.memory_space<vmem>>) attributes {dimension_semantics = [#tpu.dimension_semantics<parallel>, #tpu.dimension_semantics<parallel>], iteration_bounds = array<i64: 2, 6>, scalar_prefetch = 0 : i64, scratch_operands = 0 : i64, tpu.core_type = #tpu.core_type<tc>, window_params = [{transform_indices = @transform_0, window_bounds = array<i64: 1, 4, 1, 8, 8>}, {pipeline_mode = #tpu.pipeline_mode<synchronous>, transform_indices = @transform_1, window_bounds = array<i64: 4, 1, 1>}, {pipeline_mode = #tpu.pipeline_mode<synchronous>, transform_indices = @transform_2, window_bounds = array<i64: 4, 1, 1>}, {transform_indices = @transform_3, window_bounds = array<i64: 1, 1, 4, 10, 10>}]} {
    %cst = arith.constant 0.000000e+00 : f32
    %0 = vector.broadcast %cst : f32 to vector<4x10x10xf32>
    %c0 = arith.constant 0 : index
    %c0_0 = arith.constant 0 : index
    %c0_1 = arith.constant 0 : index
    %c0_2 = arith.constant 0 : index
    %c0_3 = arith.constant 0 : index
    %1 = vector.load %arg5[%c0, %c0_0, %c0_1, %c0_2, %c0_3] : memref<1x1x4x10x10xf32, #tpu.memory_space<vmem>>, vector<1x1x4x10x10xf32>
    %2 = vector.shape_cast %1 : vector<1x1x4x10x10xf32> to vector<4x10x10xf32>
    %3 = vector.shape_cast %0 : vector<4x10x10xf32> to vector<1x1x4x10x10xf32>
    tpu.vector_store %arg5[%c0, %c0_0, %c0_1, %c0_2, %c0_3], %3 {strides = array<i32>} : memref<1x1x4x10x10xf32, #tpu.memory_space<vmem>>, vector<1x1x4x10x10xf32>,
    %c0_i32 = arith.constant 0 : i32
    %4 = arith.cmpi sgt, %arg1, %c0_i32 : i32
    %c5_i32 = arith.constant 5 : i32
    %5 = arith.cmpi slt, %arg1, %c5_i32 : i32
    %6 = arith.andi %4, %5 : i1
    %7 = arith.extui %6 : i1 to i32
    %c0_i32_4 = arith.constant 0 : i32
    %8 = arith.cmpi ne, %7, %c0_i32_4 : i32
    scf.if %8 {
      %c0_5 = arith.constant 0 : index
      %c0_6 = arith.constant 0 : index
      %c0_7 = arith.constant 0 : index
      %c0_8 = arith.constant 0 : index
      %c0_9 = arith.constant 0 : index
      %9 = vector.load %arg2[%c0_5, %c0_6, %c0_7, %c0_8, %c0_9] : memref<1x4x1x8x8xf32, #tpu.memory_space<vmem>>, vector<1x4x1x8x8xf32>
      %10 = vector.shape_cast %9 : vector<1x4x1x8x8xf32> to vector<4x8x8xf32>
      %c0_10 = arith.constant 0 : index
      %c0_11 = arith.constant 0 : index
      %c0_12 = arith.constant 0 : index
      %11 = vector.load %arg3[%c0_10, %c0_11, %c0_12] : memref<4x1x1xf32, #tpu.memory_space<vmem>>, vector<4x1x1xf32>
      %12 = vector.broadcast %11 : vector<4x1x1xf32> to vector<4x8x8xf32>
      %13 = arith.mulf %10, %12 : vector<4x8x8xf32>
      %c0_13 = arith.constant 0 : index
      %c0_14 = arith.constant 0 : index
      %c0_15 = arith.constant 0 : index
      %14 = vector.load %arg4[%c0_13, %c0_14, %c0_15] : memref<4x1x1xf32, #tpu.memory_space<vmem>>, vector<4x1x1xf32>
      %15 = vector.broadcast %14 : vector<4x1x1xf32> to vector<4x8x8xf32>
      %16 = arith.addf %13, %15 : vector<4x8x8xf32>
      %cst_16 = arith.constant 0.000000e+00 : f32
      %17 = vector.broadcast %cst_16 : f32 to vector<4x8x8xf32>
      %18 = arith.cmpf oge, %16, %17 : vector<4x8x8xf32>
      %cst_17 = arith.constant 0.00999999977 : f32
      %19 = vector.broadcast %cst_17 : f32 to vector<4x8x8xf32>
      %20 = arith.mulf %19, %16 : vector<4x8x8xf32>
      %21 = arith.select %18, %16, %20 : vector<4x8x8xi1>, vector<4x8x8xf32>
      %c0_18 = arith.constant 0 : index
      %c0_19 = arith.constant 0 : index
      %c0_20 = arith.constant 0 : index
      %c1 = arith.constant 1 : index
      %c1_21 = arith.constant 1 : index
      %22 = vector.load %arg5[%c0_18, %c0_19, %c0_20, %c1, %c1_21] : memref<1x1x4x10x10xf32, #tpu.memory_space<vmem>>, vector<1x1x4x8x8xf32>
      %23 = vector.shape_cast %22 : vector<1x1x4x8x8xf32> to vector<4x8x8xf32>
      %24 = vector.shape_cast %21 : vector<4x8x8xf32> to vector<1x1x4x8x8xf32>
      tpu.vector_store %arg5[%c0_18, %c0_19, %c0_20, %c1, %c1_21], %24 {strides = array<i32>} : memref<1x1x4x10x10xf32, #tpu.memory_space<vmem>>, vector<1x1x4x8x8xf32>,
    } else {
    }
    return
  }
  func.func @transform_0(%arg0: i32, %arg1: i32) -> (i32, i32, i32, i32, i32) {
    %c1_i32 = arith.constant 1 : i32
    %0 = arith.subi %arg1, %c1_i32 : i32
    %c0_i32 = arith.constant 0 : i32
    %c3_i32 = arith.constant 3 : i32
    %1 = arith.maxsi %c0_i32, %0 : i32
    %2 = arith.minsi %c3_i32, %1 : i32
    %c0_i32_0 = arith.constant 0 : i32
    %c0_i32_1 = arith.constant 0 : i32
    %c0_i32_2 = arith.constant 0 : i32
    %c0_i32_3 = arith.constant 0 : i32
    return %arg0, %c0_i32_0, %2, %c0_i32_1, %c0_i32_2 : i32, i32, i32, i32, i32
  }
  func.func @transform_1(%arg0: i32, %arg1: i32) -> (i32, i32, i32) {
    %c0_i32 = arith.constant 0 : i32
    %c0_i32_0 = arith.constant 0 : i32
    %c0_i32_1 = arith.constant 0 : i32
    %c0_i32_2 = arith.constant 0 : i32
    return %c0_i32, %c0_i32_0, %c0_i32_1 : i32, i32, i32
  }
  func.func @transform_2(%arg0: i32, %arg1: i32) -> (i32, i32, i32) {
    %c0_i32 = arith.constant 0 : i32
    %c0_i32_0 = arith.constant 0 : i32
    %c0_i32_1 = arith.constant 0 : i32
    %c0_i32_2 = arith.constant 0 : i32
    return %c0_i32, %c0_i32_0, %c0_i32_1 : i32, i32, i32
  }
  func.func @transform_3(%arg0: i32, %arg1: i32) -> (i32, i32, i32, i32, i32) {
    %c0_i32 = arith.constant 0 : i32
    %c0_i32_0 = arith.constant 0 : i32
    %c0_i32_1 = arith.constant 0 : i32
    %c0_i32_2 = arith.constant 0 : i32
    return %arg0, %arg1, %c0_i32, %c0_i32_0, %c0_i32_1 : i32, i32, i32, i32, i32
  }
}

module attributes {stable_mosaic.version = 11 : i64} {
  func.func @_conv3d_kernel(%arg0: i32, %arg1: i32, %arg2: memref<1x1x4x100xf32, #tpu.memory_space<vmem>>, %arg3: memref<1x1x4x100xf32, #tpu.memory_space<vmem>>, %arg4: memref<1x1x4x100xf32, #tpu.memory_space<vmem>>, %arg5: memref<27x4x4xf32, #tpu.memory_space<vmem>>, %arg6: memref<4x1xf32, #tpu.memory_space<vmem>>, %arg7: memref<1x1x4x100xf32, #tpu.memory_space<vmem>>, %arg8: memref<4x122xf32, #tpu.memory_space<vmem>>) attributes {dimension_semantics = [#tpu.dimension_semantics<parallel>, #tpu.dimension_semantics<parallel>], iteration_bounds = array<i64: 2, 4>, scalar_prefetch = 0 : i64, scratch_operands = 1 : i64, tpu.core_type = #tpu.core_type<tc>, window_params = [{transform_indices = @transform_0, window_bounds = array<i64: 1, 1, 4, 100>}, {transform_indices = @transform_1, window_bounds = array<i64: 1, 1, 4, 100>}, {transform_indices = @transform_2, window_bounds = array<i64: 1, 1, 4, 100>}, {pipeline_mode = #tpu.pipeline_mode<synchronous>, transform_indices = @transform_3, window_bounds = array<i64: 27, 4, 4>}, {pipeline_mode = #tpu.pipeline_mode<synchronous>, transform_indices = @transform_4, window_bounds = array<i64: 4, 1>}, {transform_indices = @transform_5, window_bounds = array<i64: 1, 1, 4, 100>}]} {
    %c0 = arith.constant 0 : index
    %c0_0 = arith.constant 0 : index
    %c0_1 = arith.constant 0 : index
    %0 = vector.load %arg5[%c0, %c0_0, %c0_1] : memref<27x4x4xf32, #tpu.memory_space<vmem>>, vector<27x4x4xf32>
    %c0_2 = arith.constant 0 : index
    %c0_3 = arith.constant 0 : index
    %1 = vector.load %arg6[%c0_2, %c0_3] : memref<4x1xf32, #tpu.memory_space<vmem>>, vector<4x1xf32>
    %2 = vector.shape_cast %1 : vector<4x1xf32> to vector<4x1xf32>
    %3 = vector.broadcast %2 : vector<4x1xf32> to vector<4x100xf32>
    %cst = arith.constant 0.000000e+00 : f32
    %4 = vector.broadcast %cst : f32 to vector<4x122xf32>
    %c0_4 = arith.constant 0 : index
    %c0_5 = arith.constant 0 : index
    %5 = vector.load %arg8[%c0_4, %c0_5] : memref<4x122xf32, #tpu.memory_space<vmem>>, vector<4x122xf32>
    tpu.vector_store %arg8[%c0_4, %c0_5], %4 {strides = array<i32>} : memref<4x122xf32, #tpu.memory_space<vmem>>, vector<4x122xf32>,
    %c0_6 = arith.constant 0 : index
    %c0_7 = arith.constant 0 : index
    %c0_8 = arith.constant 0 : index
    %c0_9 = arith.constant 0 : index
    %6 = vector.load %arg2[%c0_6, %c0_7, %c0_8, %c0_9] : memref<1x1x4x100xf32, #tpu.memory_space<vmem>>, vector<1x1x4x100xf32>
    %7 = vector.shape_cast %6 : vector<1x1x4x100xf32> to vector<4x100xf32>
    %c0_10 = arith.constant 0 : index
    %c11 = arith.constant 11 : index
    %8 = vector.load %arg8[%c0_10, %c11] : memref<4x122xf32, #tpu.memory_space<vmem>>, vector<4x100xf32>
    tpu.vector_store %arg8[%c0_10, %c11], %7 {strides = array<i32>} : memref<4x122xf32, #tpu.memory_space<vmem>>, vector<4x100xf32>,
    %c0_11 = arith.constant 0 : index
    %c0_12 = arith.constant 0 : index
    %9 = vector.load %arg8[%c0_11, %c0_12] : memref<4x122xf32, #tpu.memory_space<vmem>>, vector<4x100xf32>
    %10 = vector.extract_strided_slice %0 {offsets = [0, 0, 0], sizes = [1, 4, 4], strides = [1, 1, 1]} : vector<27x4x4xf32> to vector<1x4x4xf32>
    %11 = vector.shape_cast %10 : vector<1x4x4xf32> to vector<4x4xf32>
    %cst_13 = arith.constant dense<0.000000e+00> : vector<4x100xf32>
    %12 = tpu.matmul %11, %9, %cst_13 {dimension_numbers = #tpu.dot_dimension_numbers<[1], [0], [0], [1], [0, 0, 1, 1], [], []>} : vector<4x4xf32>, vector<4x100xf32>, vector<4x100xf32> -> vector<4x100xf32>
    %13 = arith.addf %3, %12 : vector<4x100xf32>
    %c0_14 = arith.constant 0 : index
    %c1 = arith.constant 1 : index
    %14 = vector.load %arg8[%c0_14, %c1] : memref<4x122xf32, #tpu.memory_space<vmem>>, vector<4x100xf32>
    %15 = vector.extract_strided_slice %0 {offsets = [1, 0, 0], sizes = [1, 4, 4], strides = [1, 1, 1]} : vector<27x4x4xf32> to vector<1x4x4xf32>
    %16 = vector.shape_cast %15 : vector<1x4x4xf32> to vector<4x4xf32>
    %cst_15 = arith.constant dense<0.000000e+00> : vector<4x100xf32>
    %17 = tpu.matmul %16, %14, %cst_15 {dimension_numbers = #tpu.dot_dimension_numbers<[1], [0], [0], [1], [0, 0, 1, 1], [], []>} : vector<4x4xf32>, vector<4x100xf32>, vector<4x100xf32> -> vector<4x100xf32>
    %18 = arith.addf %13, %17 : vector<4x100xf32>
    %c0_16 = arith.constant 0 : index
    %c2 = arith.constant 2 : index
    %19 = vector.load %arg8[%c0_16, %c2] : memref<4x122xf32, #tpu.memory_space<vmem>>, vector<4x100xf32>
    %20 = vector.extract_strided_slice %0 {offsets = [2, 0, 0], sizes = [1, 4, 4], strides = [1, 1, 1]} : vector<27x4x4xf32> to vector<1x4x4xf32>
    %21 = vector.shape_cast %20 : vector<1x4x4xf32> to vector<4x4xf32>
    %cst_17 = arith.constant dense<0.000000e+00> : vector<4x100xf32>
    %22 = tpu.matmul %21, %19, %cst_17 {dimension_numbers = #tpu.dot_dimension_numbers<[1], [0], [0], [1], [0, 0, 1, 1], [], []>} : vector<4x4xf32>, vector<4x100xf32>, vector<4x100xf32> -> vector<4x100xf32>
    %23 = arith.addf %18, %22 : vector<4x100xf32>
    %c0_18 = arith.constant 0 : index
    %c10 = arith.constant 10 : index
    %24 = vector.load %arg8[%c0_18, %c10] : memref<4x122xf32, #tpu.memory_space<vmem>>, vector<4x100xf32>
    %25 = vector.extract_strided_slice %0 {offsets = [3, 0, 0], sizes = [1, 4, 4], strides = [1, 1, 1]} : vector<27x4x4xf32> to vector<1x4x4xf32>
    %26 = vector.shape_cast %25 : vector<1x4x4xf32> to vector<4x4xf32>
    %cst_19 = arith.constant dense<0.000000e+00> : vector<4x100xf32>
    %27 = tpu.matmul %26, %24, %cst_19 {dimension_numbers = #tpu.dot_dimension_numbers<[1], [0], [0], [1], [0, 0, 1, 1], [], []>} : vector<4x4xf32>, vector<4x100xf32>, vector<4x100xf32> -> vector<4x100xf32>
    %28 = arith.addf %23, %27 : vector<4x100xf32>
    %c0_20 = arith.constant 0 : index
    %c11_21 = arith.constant 11 : index
    %29 = vector.load %arg8[%c0_20, %c11_21] : memref<4x122xf32, #tpu.memory_space<vmem>>, vector<4x100xf32>
    %30 = vector.extract_strided_slice %0 {offsets = [4, 0, 0], sizes = [1, 4, 4], strides = [1, 1, 1]} : vector<27x4x4xf32> to vector<1x4x4xf32>
    %31 = vector.shape_cast %30 : vector<1x4x4xf32> to vector<4x4xf32>
    %cst_22 = arith.constant dense<0.000000e+00> : vector<4x100xf32>
    %32 = tpu.matmul %31, %29, %cst_22 {dimension_numbers = #tpu.dot_dimension_numbers<[1], [0], [0], [1], [0, 0, 1, 1], [], []>} : vector<4x4xf32>, vector<4x100xf32>, vector<4x100xf32> -> vector<4x100xf32>
    %33 = arith.addf %28, %32 : vector<4x100xf32>
    %c0_23 = arith.constant 0 : index
    %c12 = arith.constant 12 : index
    %34 = vector.load %arg8[%c0_23, %c12] : memref<4x122xf32, #tpu.memory_space<vmem>>, vector<4x100xf32>
    %35 = vector.extract_strided_slice %0 {offsets = [5, 0, 0], sizes = [1, 4, 4], strides = [1, 1, 1]} : vector<27x4x4xf32> to vector<1x4x4xf32>
    %36 = vector.shape_cast %35 : vector<1x4x4xf32> to vector<4x4xf32>
    %cst_24 = arith.constant dense<0.000000e+00> : vector<4x100xf32>
    %37 = tpu.matmul %36, %34, %cst_24 {dimension_numbers = #tpu.dot_dimension_numbers<[1], [0], [0], [1], [0, 0, 1, 1], [], []>} : vector<4x4xf32>, vector<4x100xf32>, vector<4x100xf32> -> vector<4x100xf32>
    %38 = arith.addf %33, %37 : vector<4x100xf32>
    %c0_25 = arith.constant 0 : index
    %c20 = arith.constant 20 : index
    %39 = vector.load %arg8[%c0_25, %c20] : memref<4x122xf32, #tpu.memory_space<vmem>>, vector<4x100xf32>
    %40 = vector.extract_strided_slice %0 {offsets = [6, 0, 0], sizes = [1, 4, 4], strides = [1, 1, 1]} : vector<27x4x4xf32> to vector<1x4x4xf32>
    %41 = vector.shape_cast %40 : vector<1x4x4xf32> to vector<4x4xf32>
    %cst_26 = arith.constant dense<0.000000e+00> : vector<4x100xf32>
    %42 = tpu.matmul %41, %39, %cst_26 {dimension_numbers = #tpu.dot_dimension_numbers<[1], [0], [0], [1], [0, 0, 1, 1], [], []>} : vector<4x4xf32>, vector<4x100xf32>, vector<4x100xf32> -> vector<4x100xf32>
    %43 = arith.addf %38, %42 : vector<4x100xf32>
    %c0_27 = arith.constant 0 : index
    %c21 = arith.constant 21 : index
    %44 = vector.load %arg8[%c0_27, %c21] : memref<4x122xf32, #tpu.memory_space<vmem>>, vector<4x100xf32>
    %45 = vector.extract_strided_slice %0 {offsets = [7, 0, 0], sizes = [1, 4, 4], strides = [1, 1, 1]} : vector<27x4x4xf32> to vector<1x4x4xf32>
    %46 = vector.shape_cast %45 : vector<1x4x4xf32> to vector<4x4xf32>
    %cst_28 = arith.constant dense<0.000000e+00> : vector<4x100xf32>
    %47 = tpu.matmul %46, %44, %cst_28 {dimension_numbers = #tpu.dot_dimension_numbers<[1], [0], [0], [1], [0, 0, 1, 1], [], []>} : vector<4x4xf32>, vector<4x100xf32>, vector<4x100xf32> -> vector<4x100xf32>
    %48 = arith.addf %43, %47 : vector<4x100xf32>
    %c0_29 = arith.constant 0 : index
    %c22 = arith.constant 22 : index
    %49 = vector.load %arg8[%c0_29, %c22] : memref<4x122xf32, #tpu.memory_space<vmem>>, vector<4x100xf32>
    %50 = vector.extract_strided_slice %0 {offsets = [8, 0, 0], sizes = [1, 4, 4], strides = [1, 1, 1]} : vector<27x4x4xf32> to vector<1x4x4xf32>
    %51 = vector.shape_cast %50 : vector<1x4x4xf32> to vector<4x4xf32>
    %cst_30 = arith.constant dense<0.000000e+00> : vector<4x100xf32>
    %52 = tpu.matmul %51, %49, %cst_30 {dimension_numbers = #tpu.dot_dimension_numbers<[1], [0], [0], [1], [0, 0, 1, 1], [], []>} : vector<4x4xf32>, vector<4x100xf32>, vector<4x100xf32> -> vector<4x100xf32>
    %53 = arith.addf %48, %52 : vector<4x100xf32>
    %c0_31 = arith.constant 0 : index
    %c0_32 = arith.constant 0 : index
    %c0_33 = arith.constant 0 : index
    %c0_34 = arith.constant 0 : index
    %54 = vector.load %arg3[%c0_31, %c0_32, %c0_33, %c0_34] : memref<1x1x4x100xf32, #tpu.memory_space<vmem>>, vector<1x1x4x100xf32>
    %55 = vector.shape_cast %54 : vector<1x1x4x100xf32> to vector<4x100xf32>
    %c0_35 = arith.constant 0 : index
    %c11_36 = arith.constant 11 : index
    %56 = vector.load %arg8[%c0_35, %c11_36] : memref<4x122xf32, #tpu.memory_space<vmem>>, vector<4x100xf32>
    tpu.vector_store %arg8[%c0_35, %c11_36], %55 {strides = array<i32>} : memref<4x122xf32, #tpu.memory_space<vmem>>, vector<4x100xf32>,
    %c0_37 = arith.constant 0 : index
    %c0_38 = arith.constant 0 : index
    %57 = vector.load %arg8[%c0_37, %c0_38] : memref<4x122xf32, #tpu.memory_space<vmem>>, vector<4x100xf32>
    %58 = vector.extract_strided_slice %0 {offsets = [9, 0, 0], sizes = [1, 4, 4], strides = [1, 1, 1]} : vector<27x4x4xf32> to vector<1x4x4xf32>
    %59 = vector.shape_cast %58 : vector<1x4x4xf32> to vector<4x4xf32>
    %cst_39 = arith.constant dense<0.000000e+00> : vector<4x100xf32>
    %60 = tpu.matmul %59, %57, %cst_39 {dimension_numbers = #tpu.dot_dimension_numbers<[1], [0], [0], [1], [0, 0, 1, 1], [], []>} : vector<4x4xf32>, vector<4x100xf32>, vector<4x100xf32> -> vector<4x100xf32>
    %61 = arith.addf %53, %60 : vector<4x100xf32>
    %c0_40 = arith.constant 0 : index
    %c1_41 = arith.constant 1 : index
    %62 = vector.load %arg8[%c0_40, %c1_41] : memref<4x122xf32, #tpu.memory_space<vmem>>, vector<4x100xf32>
    %63 = vector.extract_strided_slice %0 {offsets = [10, 0, 0], sizes = [1, 4, 4], strides = [1, 1, 1]} : vector<27x4x4xf32> to vector<1x4x4xf32>
    %64 = vector.shape_cast %63 : vector<1x4x4xf32> to vector<4x4xf32>
    %cst_42 = arith.constant dense<0.000000e+00> : vector<4x100xf32>
    %65 = tpu.matmul %64, %62, %cst_42 {dimension_numbers = #tpu.dot_dimension_numbers<[1], [0], [0], [1], [0, 0, 1, 1], [], []>} : vector<4x4xf32>, vector<4x100xf32>, vector<4x100xf32> -> vector<4x100xf32>
    %66 = arith.addf %61, %65 : vector<4x100xf32>
    %c0_43 = arith.constant 0 : index
    %c2_44 = arith.constant 2 : index
    %67 = vector.load %arg8[%c0_43, %c2_44] : memref<4x122xf32, #tpu.memory_space<vmem>>, vector<4x100xf32>
    %68 = vector.extract_strided_slice %0 {offsets = [11, 0, 0], sizes = [1, 4, 4], strides = [1, 1, 1]} : vector<27x4x4xf32> to vector<1x4x4xf32>
    %69 = vector.shape_cast %68 : vector<1x4x4xf32> to vector<4x4xf32>
    %cst_45 = arith.constant dense<0.000000e+00> : vector<4x100xf32>
    %70 = tpu.matmul %69, %67, %cst_45 {dimension_numbers = #tpu.dot_dimension_numbers<[1], [0], [0], [1], [0, 0, 1, 1], [], []>} : vector<4x4xf32>, vector<4x100xf32>, vector<4x100xf32> -> vector<4x100xf32>
    %71 = arith.addf %66, %70 : vector<4x100xf32>
    %c0_46 = arith.constant 0 : index
    %c10_47 = arith.constant 10 : index
    %72 = vector.load %arg8[%c0_46, %c10_47] : memref<4x122xf32, #tpu.memory_space<vmem>>, vector<4x100xf32>
    %73 = vector.extract_strided_slice %0 {offsets = [12, 0, 0], sizes = [1, 4, 4], strides = [1, 1, 1]} : vector<27x4x4xf32> to vector<1x4x4xf32>
    %74 = vector.shape_cast %73 : vector<1x4x4xf32> to vector<4x4xf32>
    %cst_48 = arith.constant dense<0.000000e+00> : vector<4x100xf32>
    %75 = tpu.matmul %74, %72, %cst_48 {dimension_numbers = #tpu.dot_dimension_numbers<[1], [0], [0], [1], [0, 0, 1, 1], [], []>} : vector<4x4xf32>, vector<4x100xf32>, vector<4x100xf32> -> vector<4x100xf32>
    %76 = arith.addf %71, %75 : vector<4x100xf32>
    %c0_49 = arith.constant 0 : index
    %c11_50 = arith.constant 11 : index
    %77 = vector.load %arg8[%c0_49, %c11_50] : memref<4x122xf32, #tpu.memory_space<vmem>>, vector<4x100xf32>
    %78 = vector.extract_strided_slice %0 {offsets = [13, 0, 0], sizes = [1, 4, 4], strides = [1, 1, 1]} : vector<27x4x4xf32> to vector<1x4x4xf32>
    %79 = vector.shape_cast %78 : vector<1x4x4xf32> to vector<4x4xf32>
    %cst_51 = arith.constant dense<0.000000e+00> : vector<4x100xf32>
    %80 = tpu.matmul %79, %77, %cst_51 {dimension_numbers = #tpu.dot_dimension_numbers<[1], [0], [0], [1], [0, 0, 1, 1], [], []>} : vector<4x4xf32>, vector<4x100xf32>, vector<4x100xf32> -> vector<4x100xf32>
    %81 = arith.addf %76, %80 : vector<4x100xf32>
    %c0_52 = arith.constant 0 : index
    %c12_53 = arith.constant 12 : index
    %82 = vector.load %arg8[%c0_52, %c12_53] : memref<4x122xf32, #tpu.memory_space<vmem>>, vector<4x100xf32>
    %83 = vector.extract_strided_slice %0 {offsets = [14, 0, 0], sizes = [1, 4, 4], strides = [1, 1, 1]} : vector<27x4x4xf32> to vector<1x4x4xf32>
    %84 = vector.shape_cast %83 : vector<1x4x4xf32> to vector<4x4xf32>
    %cst_54 = arith.constant dense<0.000000e+00> : vector<4x100xf32>
    %85 = tpu.matmul %84, %82, %cst_54 {dimension_numbers = #tpu.dot_dimension_numbers<[1], [0], [0], [1], [0, 0, 1, 1], [], []>} : vector<4x4xf32>, vector<4x100xf32>, vector<4x100xf32> -> vector<4x100xf32>
    %86 = arith.addf %81, %85 : vector<4x100xf32>
    %c0_55 = arith.constant 0 : index
    %c20_56 = arith.constant 20 : index
    %87 = vector.load %arg8[%c0_55, %c20_56] : memref<4x122xf32, #tpu.memory_space<vmem>>, vector<4x100xf32>
    %88 = vector.extract_strided_slice %0 {offsets = [15, 0, 0], sizes = [1, 4, 4], strides = [1, 1, 1]} : vector<27x4x4xf32> to vector<1x4x4xf32>
    %89 = vector.shape_cast %88 : vector<1x4x4xf32> to vector<4x4xf32>
    %cst_57 = arith.constant dense<0.000000e+00> : vector<4x100xf32>
    %90 = tpu.matmul %89, %87, %cst_57 {dimension_numbers = #tpu.dot_dimension_numbers<[1], [0], [0], [1], [0, 0, 1, 1], [], []>} : vector<4x4xf32>, vector<4x100xf32>, vector<4x100xf32> -> vector<4x100xf32>
    %91 = arith.addf %86, %90 : vector<4x100xf32>
    %c0_58 = arith.constant 0 : index
    %c21_59 = arith.constant 21 : index
    %92 = vector.load %arg8[%c0_58, %c21_59] : memref<4x122xf32, #tpu.memory_space<vmem>>, vector<4x100xf32>
    %93 = vector.extract_strided_slice %0 {offsets = [16, 0, 0], sizes = [1, 4, 4], strides = [1, 1, 1]} : vector<27x4x4xf32> to vector<1x4x4xf32>
    %94 = vector.shape_cast %93 : vector<1x4x4xf32> to vector<4x4xf32>
    %cst_60 = arith.constant dense<0.000000e+00> : vector<4x100xf32>
    %95 = tpu.matmul %94, %92, %cst_60 {dimension_numbers = #tpu.dot_dimension_numbers<[1], [0], [0], [1], [0, 0, 1, 1], [], []>} : vector<4x4xf32>, vector<4x100xf32>, vector<4x100xf32> -> vector<4x100xf32>
    %96 = arith.addf %91, %95 : vector<4x100xf32>
    %c0_61 = arith.constant 0 : index
    %c22_62 = arith.constant 22 : index
    %97 = vector.load %arg8[%c0_61, %c22_62] : memref<4x122xf32, #tpu.memory_space<vmem>>, vector<4x100xf32>
    %98 = vector.extract_strided_slice %0 {offsets = [17, 0, 0], sizes = [1, 4, 4], strides = [1, 1, 1]} : vector<27x4x4xf32> to vector<1x4x4xf32>
    %99 = vector.shape_cast %98 : vector<1x4x4xf32> to vector<4x4xf32>
    %cst_63 = arith.constant dense<0.000000e+00> : vector<4x100xf32>
    %100 = tpu.matmul %99, %97, %cst_63 {dimension_numbers = #tpu.dot_dimension_numbers<[1], [0], [0], [1], [0, 0, 1, 1], [], []>} : vector<4x4xf32>, vector<4x100xf32>, vector<4x100xf32> -> vector<4x100xf32>
    %101 = arith.addf %96, %100 : vector<4x100xf32>
    %c0_64 = arith.constant 0 : index
    %c0_65 = arith.constant 0 : index
    %c0_66 = arith.constant 0 : index
    %c0_67 = arith.constant 0 : index
    %102 = vector.load %arg4[%c0_64, %c0_65, %c0_66, %c0_67] : memref<1x1x4x100xf32, #tpu.memory_space<vmem>>, vector<1x1x4x100xf32>
    %103 = vector.shape_cast %102 : vector<1x1x4x100xf32> to vector<4x100xf32>
    %c0_68 = arith.constant 0 : index
    %c11_69 = arith.constant 11 : index
    %104 = vector.load %arg8[%c0_68, %c11_69] : memref<4x122xf32, #tpu.memory_space<vmem>>, vector<4x100xf32>
    tpu.vector_store %arg8[%c0_68, %c11_69], %103 {strides = array<i32>} : memref<4x122xf32, #tpu.memory_space<vmem>>, vector<4x100xf32>,
    %c0_70 = arith.constant 0 : index
    %c0_71 = arith.constant 0 : index
    %105 = vector.load %arg8[%c0_70, %c0_71] : memref<4x122xf32, #tpu.memory_space<vmem>>, vector<4x100xf32>
    %106 = vector.extract_strided_slice %0 {offsets = [18, 0, 0], sizes = [1, 4, 4], strides = [1, 1, 1]} : vector<27x4x4xf32> to vector<1x4x4xf32>
    %107 = vector.shape_cast %106 : vector<1x4x4xf32> to vector<4x4xf32>
    %cst_72 = arith.constant dense<0.000000e+00> : vector<4x100xf32>
    %108 = tpu.matmul %107, %105, %cst_72 {dimension_numbers = #tpu.dot_dimension_numbers<[1], [0], [0], [1], [0, 0, 1, 1], [], []>} : vector<4x4xf32>, vector<4x100xf32>, vector<4x100xf32> -> vector<4x100xf32>
    %109 = arith.addf %101, %108 : vector<4x100xf32>
    %c0_73 = arith.constant 0 : index
    %c1_74 = arith.constant 1 : index
    %110 = vector.load %arg8[%c0_73, %c1_74] : memref<4x122xf32, #tpu.memory_space<vmem>>, vector<4x100xf32>
    %111 = vector.extract_strided_slice %0 {offsets = [19, 0, 0], sizes = [1, 4, 4], strides = [1, 1, 1]} : vector<27x4x4xf32> to vector<1x4x4xf32>
    %112 = vector.shape_cast %111 : vector<1x4x4xf32> to vector<4x4xf32>
    %cst_75 = arith.constant dense<0.000000e+00> : vector<4x100xf32>
    %113 = tpu.matmul %112, %110, %cst_75 {dimension_numbers = #tpu.dot_dimension_numbers<[1], [0], [0], [1], [0, 0, 1, 1], [], []>} : vector<4x4xf32>, vector<4x100xf32>, vector<4x100xf32> -> vector<4x100xf32>
    %114 = arith.addf %109, %113 : vector<4x100xf32>
    %c0_76 = arith.constant 0 : index
    %c2_77 = arith.constant 2 : index
    %115 = vector.load %arg8[%c0_76, %c2_77] : memref<4x122xf32, #tpu.memory_space<vmem>>, vector<4x100xf32>
    %116 = vector.extract_strided_slice %0 {offsets = [20, 0, 0], sizes = [1, 4, 4], strides = [1, 1, 1]} : vector<27x4x4xf32> to vector<1x4x4xf32>
    %117 = vector.shape_cast %116 : vector<1x4x4xf32> to vector<4x4xf32>
    %cst_78 = arith.constant dense<0.000000e+00> : vector<4x100xf32>
    %118 = tpu.matmul %117, %115, %cst_78 {dimension_numbers = #tpu.dot_dimension_numbers<[1], [0], [0], [1], [0, 0, 1, 1], [], []>} : vector<4x4xf32>, vector<4x100xf32>, vector<4x100xf32> -> vector<4x100xf32>
    %119 = arith.addf %114, %118 : vector<4x100xf32>
    %c0_79 = arith.constant 0 : index
    %c10_80 = arith.constant 10 : index
    %120 = vector.load %arg8[%c0_79, %c10_80] : memref<4x122xf32, #tpu.memory_space<vmem>>, vector<4x100xf32>
    %121 = vector.extract_strided_slice %0 {offsets = [21, 0, 0], sizes = [1, 4, 4], strides = [1, 1, 1]} : vector<27x4x4xf32> to vector<1x4x4xf32>
    %122 = vector.shape_cast %121 : vector<1x4x4xf32> to vector<4x4xf32>
    %cst_81 = arith.constant dense<0.000000e+00> : vector<4x100xf32>
    %123 = tpu.matmul %122, %120, %cst_81 {dimension_numbers = #tpu.dot_dimension_numbers<[1], [0], [0], [1], [0, 0, 1, 1], [], []>} : vector<4x4xf32>, vector<4x100xf32>, vector<4x100xf32> -> vector<4x100xf32>
    %124 = arith.addf %119, %123 : vector<4x100xf32>
    %c0_82 = arith.constant 0 : index
    %c11_83 = arith.constant 11 : index
    %125 = vector.load %arg8[%c0_82, %c11_83] : memref<4x122xf32, #tpu.memory_space<vmem>>, vector<4x100xf32>
    %126 = vector.extract_strided_slice %0 {offsets = [22, 0, 0], sizes = [1, 4, 4], strides = [1, 1, 1]} : vector<27x4x4xf32> to vector<1x4x4xf32>
    %127 = vector.shape_cast %126 : vector<1x4x4xf32> to vector<4x4xf32>
    %cst_84 = arith.constant dense<0.000000e+00> : vector<4x100xf32>
    %128 = tpu.matmul %127, %125, %cst_84 {dimension_numbers = #tpu.dot_dimension_numbers<[1], [0], [0], [1], [0, 0, 1, 1], [], []>} : vector<4x4xf32>, vector<4x100xf32>, vector<4x100xf32> -> vector<4x100xf32>
    %129 = arith.addf %124, %128 : vector<4x100xf32>
    %c0_85 = arith.constant 0 : index
    %c12_86 = arith.constant 12 : index
    %130 = vector.load %arg8[%c0_85, %c12_86] : memref<4x122xf32, #tpu.memory_space<vmem>>, vector<4x100xf32>
    %131 = vector.extract_strided_slice %0 {offsets = [23, 0, 0], sizes = [1, 4, 4], strides = [1, 1, 1]} : vector<27x4x4xf32> to vector<1x4x4xf32>
    %132 = vector.shape_cast %131 : vector<1x4x4xf32> to vector<4x4xf32>
    %cst_87 = arith.constant dense<0.000000e+00> : vector<4x100xf32>
    %133 = tpu.matmul %132, %130, %cst_87 {dimension_numbers = #tpu.dot_dimension_numbers<[1], [0], [0], [1], [0, 0, 1, 1], [], []>} : vector<4x4xf32>, vector<4x100xf32>, vector<4x100xf32> -> vector<4x100xf32>
    %134 = arith.addf %129, %133 : vector<4x100xf32>
    %c0_88 = arith.constant 0 : index
    %c20_89 = arith.constant 20 : index
    %135 = vector.load %arg8[%c0_88, %c20_89] : memref<4x122xf32, #tpu.memory_space<vmem>>, vector<4x100xf32>
    %136 = vector.extract_strided_slice %0 {offsets = [24, 0, 0], sizes = [1, 4, 4], strides = [1, 1, 1]} : vector<27x4x4xf32> to vector<1x4x4xf32>
    %137 = vector.shape_cast %136 : vector<1x4x4xf32> to vector<4x4xf32>
    %cst_90 = arith.constant dense<0.000000e+00> : vector<4x100xf32>
    %138 = tpu.matmul %137, %135, %cst_90 {dimension_numbers = #tpu.dot_dimension_numbers<[1], [0], [0], [1], [0, 0, 1, 1], [], []>} : vector<4x4xf32>, vector<4x100xf32>, vector<4x100xf32> -> vector<4x100xf32>
    %139 = arith.addf %134, %138 : vector<4x100xf32>
    %c0_91 = arith.constant 0 : index
    %c21_92 = arith.constant 21 : index
    %140 = vector.load %arg8[%c0_91, %c21_92] : memref<4x122xf32, #tpu.memory_space<vmem>>, vector<4x100xf32>
    %141 = vector.extract_strided_slice %0 {offsets = [25, 0, 0], sizes = [1, 4, 4], strides = [1, 1, 1]} : vector<27x4x4xf32> to vector<1x4x4xf32>
    %142 = vector.shape_cast %141 : vector<1x4x4xf32> to vector<4x4xf32>
    %cst_93 = arith.constant dense<0.000000e+00> : vector<4x100xf32>
    %143 = tpu.matmul %142, %140, %cst_93 {dimension_numbers = #tpu.dot_dimension_numbers<[1], [0], [0], [1], [0, 0, 1, 1], [], []>} : vector<4x4xf32>, vector<4x100xf32>, vector<4x100xf32> -> vector<4x100xf32>
    %144 = arith.addf %139, %143 : vector<4x100xf32>
    %c0_94 = arith.constant 0 : index
    %c22_95 = arith.constant 22 : index
    %145 = vector.load %arg8[%c0_94, %c22_95] : memref<4x122xf32, #tpu.memory_space<vmem>>, vector<4x100xf32>
    %146 = vector.extract_strided_slice %0 {offsets = [26, 0, 0], sizes = [1, 4, 4], strides = [1, 1, 1]} : vector<27x4x4xf32> to vector<1x4x4xf32>
    %147 = vector.shape_cast %146 : vector<1x4x4xf32> to vector<4x4xf32>
    %cst_96 = arith.constant dense<0.000000e+00> : vector<4x100xf32>
    %148 = tpu.matmul %147, %145, %cst_96 {dimension_numbers = #tpu.dot_dimension_numbers<[1], [0], [0], [1], [0, 0, 1, 1], [], []>} : vector<4x4xf32>, vector<4x100xf32>, vector<4x100xf32> -> vector<4x100xf32>
    %149 = arith.addf %144, %148 : vector<4x100xf32>
    %c0_97 = arith.constant 0 : index
    %c0_98 = arith.constant 0 : index
    %c0_99 = arith.constant 0 : index
    %c0_100 = arith.constant 0 : index
    %150 = vector.load %arg7[%c0_97, %c0_98, %c0_99, %c0_100] : memref<1x1x4x100xf32, #tpu.memory_space<vmem>>, vector<1x1x4x100xf32>
    %151 = vector.shape_cast %150 : vector<1x1x4x100xf32> to vector<4x100xf32>
    %152 = vector.shape_cast %149 : vector<4x100xf32> to vector<1x1x4x100xf32>
    tpu.vector_store %arg7[%c0_97, %c0_98, %c0_99, %c0_100], %152 {strides = array<i32>} : memref<1x1x4x100xf32, #tpu.memory_space<vmem>>, vector<1x1x4x100xf32>,
    return
  }
  func.func @transform_0(%arg0: i32, %arg1: i32) -> (i32, i32, i32, i32) {
    %c0_i32 = arith.constant 0 : i32
    %0 = arith.addi %arg1, %c0_i32 : i32
    %c0_i32_0 = arith.constant 0 : i32
    %c0_i32_1 = arith.constant 0 : i32
    %c0_i32_2 = arith.constant 0 : i32
    return %arg0, %0, %c0_i32_0, %c0_i32_1 : i32, i32, i32, i32
  }
  func.func @transform_1(%arg0: i32, %arg1: i32) -> (i32, i32, i32, i32) {
    %c1_i32 = arith.constant 1 : i32
    %0 = arith.addi %arg1, %c1_i32 : i32
    %c0_i32 = arith.constant 0 : i32
    %c0_i32_0 = arith.constant 0 : i32
    %c0_i32_1 = arith.constant 0 : i32
    return %arg0, %0, %c0_i32, %c0_i32_0 : i32, i32, i32, i32
  }
  func.func @transform_2(%arg0: i32, %arg1: i32) -> (i32, i32, i32, i32) {
    %c2_i32 = arith.constant 2 : i32
    %0 = arith.addi %arg1, %c2_i32 : i32
    %c0_i32 = arith.constant 0 : i32
    %c0_i32_0 = arith.constant 0 : i32
    %c0_i32_1 = arith.constant 0 : i32
    return %arg0, %0, %c0_i32, %c0_i32_0 : i32, i32, i32, i32
  }
  func.func @transform_3(%arg0: i32, %arg1: i32) -> (i32, i32, i32) {
    %c0_i32 = arith.constant 0 : i32
    %c0_i32_0 = arith.constant 0 : i32
    %c0_i32_1 = arith.constant 0 : i32
    %c0_i32_2 = arith.constant 0 : i32
    return %c0_i32, %c0_i32_0, %c0_i32_1 : i32, i32, i32
  }
  func.func @transform_4(%arg0: i32, %arg1: i32) -> (i32, i32) {
    %c0_i32 = arith.constant 0 : i32
    %c0_i32_0 = arith.constant 0 : i32
    %c0_i32_1 = arith.constant 0 : i32
    return %c0_i32, %c0_i32_0 : i32, i32
  }
  func.func @transform_5(%arg0: i32, %arg1: i32) -> (i32, i32, i32, i32) {
    %c0_i32 = arith.constant 0 : i32
    %c0_i32_0 = arith.constant 0 : i32
    %c0_i32_1 = arith.constant 0 : i32
    return %arg0, %arg1, %c0_i32, %c0_i32_0 : i32, i32, i32, i32
  }
}

</mosaic_0001>

<bundles_post_ra>
// kernel: single_layer_bn_forward.2
= control target key start
LH: loop header
LB: loop body
LE: loop exit
PB: predicated region body
PF: predicated region fallthrough
CT: control target
= control target key end

     0   :  { %s662_s12 = smov 0   ;;  %s664_s13 = smov 0   ;;  %s803_s0 = inlined_call_operand.vmem [shape: f32[2,4,4,8,8], index: 0, kind: input, shape index: {}]   ;;  %s804_s1 = inlined_call_operand.vmem [shape: f32[4,1,1], index: 1, kind: input, shape index: {}]   ;;  %s805_s2 = inlined_call_operand.vmem [shape: f32[4,1,1], index: 2, kind: input, shape index: {}]   ;;  %s806_s3 = inlined_call_operand.vmem [shape: f32[2,6,4,10,10], index: 3, kind: output, shape index: {}]  }
   0x1   :  { %s666_s14 = smov 0   ;;  %s668_s15 = smov 0  }
   0x2   :  { %s670_s16 = smov 0   ;;  %s672_s17 = smov 0  }
   0x3   :  { %s674_s18 = smov 0  }
   0x4 LB: > { %s22_s19 = sadd.s32 1, %s629_s16  ;;  %s25_s20 = sadd.s32 1, %s633_s17  ;;  %s637_s18 = sphi %s674_s18, %s13_s18   ;;  %s633_s17 = sphi %s672_s17, %s813_s17   ;;  %s629_s16 = sphi %s670_s16, %s812_s16   ;;  %s625_s15 = sphi %s668_s15, %s811_s15   ;;  %s621_s14 = sphi %s666_s14, %s810_s14   ;;  %s617_s13 = sphi %s664_s13, %s809_s13   ;;  %s613_s12 = sphi %s662_s12, %s808_s12  }
   0x5   : > { %p23_p0 = scmp.ge.s32.totalorder %s22_s19, 6  ;;  %s477_s21 = sadd.s32 4294967295, %s629_s16 }
   0x6   : > { %p30_p1 = scmp.gt.s32.totalorder %s477_s21, 0  ;;  %p478_p2 = scmp.lt.s32.totalorder %s477_s21, 3 }
   0x7   : > { %s815_s19 = smov (%p23_p0, %s22_s19), 0  ;;  %s817_s20 = smov (!%p23_p0, %s25_s20), %s633_s17 }
   0x8   : > { %s819_s21 = smov (!%p30_p1, %s477_s21), 0  ;;  %p27_p3 = scmp.ge.s32.totalorder %s817_s20, 2 }
   0x9   : > { %s483_s22 = sadd.s32 4294967295, %s815_s19  ;;  %s821_s21 = smov (!%p478_p2, %s819_s21), 3 }
   0xa   : > { %s823_s20 = smov (%p27_p3, %s817_s20), 0  ;;  %p35_p4 = scmp.gt.s32.totalorder %s483_s22, 0 }
   0xb   : > { %p484_p5 = scmp.lt.s32.totalorder %s483_s22, 3  ;;  %s39_s23 = ssub.s32 %s633_s17, %s823_s20 }
   0xc   : > { %s825_s22 = smov (!%p35_p4, %s483_s22), 0  ;;  %p51_p6 = scmp.ne.s32.totalorder %s617_s13, %s613_s12 }
   0xd   : > { %p52_p7 = scmp.eq.s32.totalorder %s637_s18, 0  ;;  %s827_s22 = smov (!%p484_p5, %s825_s22), 3 }
   0xe   : > { %s40_s24 = ssub.s32 %s821_s21, %s827_s22  ;;  %s44_s26 = sadd.s32 1, %s617_s13 }
   0xf   : > { %p53_p8 = por %p52_p7, %p51_p6  ;;  %s41_s25 = sor.u32 %s40_s24, %s39_s23 }
  0x10   : > { %p42_p9 = scmp.eq.s32.totalorder %s41_s25, 0  ;;  %p490_p10 = scmp.ge.s32.totalorder %s637_s18, 12 }
  0x12   : > { %s713_s27 = scalar_select %p42_p9, %s617_s13, %s44_s26  }
  0x13   : > { %153 = sbr.rel (%p490_p10) target bundleno = 34 (0x22), region = 24 }
  0x18   : > { %156 = sbr.rel (!%p53_p8) target bundleno = 34 (0x22), region = 28  ;;  %s158_s28 = sand.u32 (%p53_p8), 1, %s617_s13  }
  0x19   : > { %s498_s29 = sshll.u32 (%p53_p8), %s633_s17, 4  ;;  %s491_s30 = sshll.u32 (%p53_p8), %s158_s28, 5 }
  0x1a   : > { %s167_s4 = sadd.s32 (%p53_p8), %s821_s21, %s498_s29  ;;  %s160_s9 = scalar_lea.vmem (%p53_p8), [#allocation2], %s491_s30 }
  0x1b   : > { %s499_s5 = sshll.u32 (%p53_p8), %s167_s4, 3 }
  0x1c   : > { %s169_s8 = scalar_lea.vmem (%p53_p8), %s803_s0, %s499_s5 }
  0x1d   : > { %v204_v0 = vld [vmem:[%s169_s8] sm:$0xff] }
  0x1e   : > { %v206_v1 = vld [vmem:[%s169_s8 + $0x20] sm:$0xff]  ;;  %205 = vst [vmem:[%s160_s9] sm:$0xff] %v204_v0 }
  0x1f   : > { %v208_v2 = vld [vmem:[%s169_s8 + $0x40] sm:$0xff]  ;;  %207 = vst [vmem:[%s160_s9 + $0x8] sm:$0xff] %v206_v1 }
  0x20   : > { %v210_v3 = vld [vmem:[%s169_s8 + $0x60] sm:$0xff]  ;;  %209 = vst [vmem:[%s160_s9 + $0x10] sm:$0xff] %v208_v2 }
  0x21   : > { %211 = vst [vmem:[%s160_s9 + $0x18] sm:$0xff] %v210_v3 }
  0x22 PF: > { %p500_p11 = scmp.ge.s32.totalorder %s637_s18, 1  ;;  %p216_p12 = scmp.lt.s32.totalorder %s637_s18, 13 }
  0x24   : > { %p217_p13 = pnand %p500_p11, %p216_p12 }
  0x25   : > { %s223_s10 = sand.u32 (!%p217_p13), 1, %s613_s12   ;;  %p255_p0 = scmp.lt.s32.totalorder (!%p217_p13), %s625_s15, 1 }
  0x26   : > { %220 = sbr.rel (%p217_p13) target bundleno = 312 (0x138), region = 66  ;;  %s501_s11 = sshll.u32 (!%p217_p13), %s223_s10, 5 }
  0x27   : > { %p257_p1 = scmp.lt.s32.totalorder (!%p217_p13), %s621_s14, 5  ;;  %p274_p2 = scmp.gt.s32.totalorder (!%p217_p13), %s621_s14, 0 }
  0x28   : > { %s746_s12 = scalar_lea.vmem (!%p217_p13), [#allocation2], %s501_s11 }
  0x29   : > { %p729_p3 = pnand (!%p217_p13), %p274_p2, %p257_p1 }
  0x2b   : > { %s829_s15 = smov (!%p255_p0, %s625_s15), 1  ;;  %s831_s14 = smov (!%p257_p1, %s621_s14), 5  ;;  %vm264_vm0 = vcmask 80896   ;;  %v639_v4 = vmov 0.0   ;;  %vm266_vm1 = vcmask 74752  }
  0x2c   : > { %s512_s21 = smul.u32 48, %s829_s15  ;;  %s502_s23 = sshll.u32 %s831_s14, 3 }
  0x2d   : > { %s641_s26 = smov (!%p729_p3), 1  }
  0x2e   : > { %s261_s24 = sadd.s32 %s512_s21, %s502_s23 }
  0x2f   : > { %s503_s25 = sshll.u32 %s261_s24, 3 }
  0x30   : > { %s736_s29 = scalar_lea.vmem %s806_s3, %s503_s25 }
  0x31   : > { %265 = vst.msk [vmem:[%s736_s29] sm:$0xff] %vm264_vm0, %v639_v4 }
  0x32   : > { %268 = vst.msk [vmem:[%s736_s29 + $0x10] sm:$0xff] %vm264_vm0, %v639_v4 }
  0x33   : > { %270 = vst.msk [vmem:[%s736_s29 + $0x20] sm:$0xff] %vm264_vm0, %v639_v4 }
  0x34   : > { %272 = vst.msk [vmem:[%s736_s29 + $0x30] sm:$0xff] %vm264_vm0, %v639_v4  ;;  %279 = sbr.rel (%p729_p3) target bundleno = 312 (0x138), region = 74 }
  0x35   : > { %267 = vst.msk [vmem:[%s736_s29 + $0x8] sm:$0x3] %vm266_vm1, %v639_v4 }
  0x36   : > { %269 = vst.msk [vmem:[%s736_s29 + $0x18] sm:$0x3] %vm266_vm1, %v639_v4 }
  0x37   : > { %271 = vst.msk [vmem:[%s736_s29 + $0x28] sm:$0x3] %vm266_vm1, %v639_v4 }
  0x38   : > { %273 = vst.msk [vmem:[%s736_s29 + $0x38] sm:$0x3] %vm266_vm1, %v639_v4 }
  0x39   : > { %v575_v5 = vld [vmem:[%s804_s1 + $0x2] ss:$0 sm:$0xff]  ;;  %v640_v6 = vmov 0   ;;  %v576_v7 = vld [vmem:[%s804_s1] ss:$0 sm:$0xff]  ;;  %v281_v21 = vld [vmem:[%s746_s12 + $0x8] sm:$0xff] }
  0x3a   : > { %573 = vset.pattern.permute.xlu1 %v640_v6  ;;  %572 = vset.pattern.permute.xlu0 %v640_v6  ;;  %v581_v8 = vld [vmem:[%s805_s2] ss:$0 sm:$0xff]  ;;  %v577_v9 = vld [vmem:[%s804_s1 + $0x3] ss:$0 sm:$0xff]  ;;  %v578_v10 = vld [vmem:[%s804_s1 + $0x1] ss:$0 sm:$0xff] }
  0x3b   : > { %305 = vperm.xlu1 %573, %v575_v5   ;;  %574 = vset.pattern.permute.xlu2 %v640_v6  ;;  %v582_v11 = vld [vmem:[%s805_s2 + $0x1] ss:$0 sm:$0xff]  ;;  %v579_v12 = vld [vmem:[%s805_s2 + $0x3] ss:$0 sm:$0xff]  ;;  %v580_v13 = vld [vmem:[%s805_s2 + $0x2] ss:$0 sm:$0xff] }
  0x3c   : > { %297 = vperm.xlu0 %572, %v576_v7   ;;  %329 = vperm.xlu2 %574, %v581_v8   ;;  %v280_v14 = vld [vmem:[%s746_s12] sm:$0xff]  ;;  %v283_v25 = vld [vmem:[%s746_s12 + $0x18] sm:$0xff]  ;;  %v282_v27 = vld [vmem:[%s746_s12 + $0x10] sm:$0xff]  ;;  %vm376_vm6 = vcmask 72712  }
  0x43   : > { %309 = vperm.xlu1 %573, %v577_v9  }
  0x44   : > { %301 = vperm.xlu0 %572, %v578_v10   ;;  %333 = vperm.xlu2 %574, %v582_v11  }
  0x4b   : > { %341 = vperm.xlu1 %573, %v579_v12  }
  0x4c   : > { %337 = vperm.xlu0 %572, %v580_v13  }
  0x96   : > { %v330_v16 = vpop.permute.xlu2 %329 }
  0x9e   : > { %v334_v28 = vpop.permute.xlu2 %333 }
  0xad   : > { %v306_v15 = vpop.permute.xlu1 %305 }
  0xae   : > { %v298_v17 = vpop.permute.xlu0 %297  ;;  %v314_v31 = vmul.f32 %v306_v15, %v282_v27 }
  0xaf   : > { %v312_v18 = vmul.f32 %v298_v17, %v280_v14 }
  0xb1   : > { %v344_v19 = vadd.f32 %v330_v16, %v312_v18 }
  0xb3   : > { %vm348_vm2 = vcmp.ge.f32.partialorder %v344_v19, 0.0  ;;  %v352_v20 = vmul.f32 0.01, %v344_v19 }
  0xb5   : > { %v310_v22 = vpop.permute.xlu1 %309  ;;  %v356_v23 = vsel %vm348_vm2, %v344_v19, %v352_v20 }
  0xb6   : > { %v302_v24 = vpop.permute.xlu0 %301  ;;  %364 = vrot.lane.b32.xlu2 %v356_v23, %s641_s26  ;;  %v315_v30 = vmul.f32 %v310_v22, %v283_v25 }
  0xb7   : > { %v313_v26 = vmul.f32 %v302_v24, %v281_v21 }
  0xb9   : > { %v345_v29 = vadd.f32 %v334_v28, %v313_v26 }
  0xbb   : > { %vm349_vm3 = vcmp.ge.f32.partialorder %v345_v29, 0.0  ;;  %v353_v32 = vmul.f32 0.01, %v345_v29 }
  0xbd   : > { %v342_v33 = vpop.permute.xlu1 %341  ;;  %v357_v34 = vsel %vm349_vm3, %v345_v29, %v353_v32 }
  0xbe   : > { %v347_v35 = vadd.f32 %v342_v33, %v315_v30  ;;  %v338_v36 = vpop.permute.xlu0 %337  ;;  %366 = vrot.lane.b32.xlu0 %v357_v34, %s641_s26 }
  0xbf   : > { %v346_v37 = vadd.f32 %v338_v36, %v314_v31 }
  0xc0   : > { %v355_v38 = vmul.f32 0.01, %v347_v35  ;;  %vm351_vm4 = vcmp.ge.f32.partialorder %v347_v35, 0.0 }
  0xc1   : > { %v354_v39 = vmul.f32 0.01, %v346_v37  ;;  %vm350_vm5 = vcmp.ge.f32.partialorder %v346_v37, 0.0 }
  0xc2   : > { %v359_v40 = vsel %vm351_vm4, %v347_v35, %v355_v38 }
  0xc3   : > { %v358_v41 = vsel %vm350_vm5, %v346_v37, %v354_v39  ;;  %370 = vrot.lane.b32.xlu2 %v359_v40, %s641_s26 }
  0xc4   : > { %368 = vrot.lane.b32.xlu1 %v358_v41, %s641_s26 }
 0x110   : > { %v365_v42 = vpop.permute.xlu2 %364 }
 0x111   : > { %377 = vst.msk [vmem:[%s736_s29 + $0x1] sm:$0xff] %vm376_vm6, %v365_v42 }
 0x11d   : > { %v371_v43 = vpop.permute.xlu2 %370 }
 0x11e   : > { %380 = vst.msk [vmem:[%s736_s29 + $0x31] sm:$0xff] %vm376_vm6, %v371_v43 }
 0x130   : > { %v367_v44 = vpop.permute.xlu0 %366 }
 0x131   : > { %378 = vst.msk [vmem:[%s736_s29 + $0x11] sm:$0xff] %vm376_vm6, %v367_v44 }
 0x136   : > { %v369_v45 = vpop.permute.xlu1 %368 }
 0x137   : > { %379 = vst.msk [vmem:[%s736_s29 + $0x21] sm:$0xff] %vm376_vm6, %v369_v45 }
 0x138 PF: > { %s13_s18 = sadd.s32 1, %s637_s18   ;;  %s808_s12 = smov %s617_s13 }
 0x139   : > { %p10_p4 = scmp.ge.s32.totalorder %s13_s18, 14   ;;  %s809_s13 = smov %s713_s27 }
 0x13a   : > { %s810_s14 = smov %s629_s16  ;;  %s811_s15 = smov %s633_s17 }
 0x13b   : > { %s812_s16 = smov %s815_s19  ;;  %s813_s17 = smov %s823_s20 }
 0x13c   :  { %12 = sbr.rel (!%p10_p4) target bundleno = 4 (0x4), region = 109 }

// kernel: single_layer_bn_forward.3
= control target key start
LH: loop header
LB: loop body
LE: loop exit
PB: predicated region body
PF: predicated region fallthrough
CT: control target
= control target key end

     0   :  { %s1468_s18 = smov 0   ;;  %s1470_s19 = smov 0   ;;  %s1706_s0 = inlined_call_operand.vmem [shape: f32[2,6,4,100], index: 0, kind: input, shape index: {}, may-alias: {0,1,2}]   ;;  %s1707_s1 = inlined_call_operand.vmem [shape: f32[2,6,4,100], index: 1, kind: input, shape index: {}, may-alias: {0,1,2}]   ;;  %s1708_s2 = inlined_call_operand.vmem [shape: f32[2,6,4,100], index: 2, kind: input, shape index: {}, may-alias: {0,1,2}]   ;;  %s1709_s3 = inlined_call_operand.vmem [shape: f32[27,4,4], index: 3, kind: input, shape index: {}]   ;;  %s1710_s4 = inlined_call_operand.vmem [shape: f32[4,1], index: 4, kind: input, shape index: {}]   ;;  %s1711_s5 = inlined_call_operand.vmem [shape: f32[2,4,4,100], index: 5, kind: output, shape index: {}]  }
   0x1   :  { %s1472_s20 = smov 0   ;;  %s1474_s21 = smov 0  }
   0x2   :  { %s1476_s22 = smov 0  }
   0x3 LB: > { %s24_s23 = sadd.s32 1, %s1417_s20  ;;  %s27_s24 = sadd.s32 1, %s1421_s21  ;;  %s1425_s22 = sphi %s1476_s22, %s15_s22   ;;  %s1421_s21 = sphi %s1474_s21, %s1715_s21   ;;  %s1417_s20 = sphi %s1472_s20, %s1714_s20   ;;  %s1413_s19 = sphi %s1470_s19, %s1713_s19   ;;  %s1409_s18 = sphi %s1468_s18, %s1712_s18  }
   0x4   : > { %p25_p0 = scmp.ge.s32.totalorder %s24_s23, 4  ;;  %p1272_p1 = scmp.ge.s32.totalorder %s1425_s22, 1 }
   0x5   : > { %p244_p2 = scmp.lt.s32.totalorder %s1425_s22, 9 }
   0x6   : > { %s1717_s23 = smov (%p25_p0, %s24_s23), 0  ;;  %s1719_s24 = smov (!%p25_p0, %s27_s24), %s1421_s21 }
   0x7   : > { %p245_p3 = pnand %p1272_p1, %p244_p2  ;;  %p29_p4 = scmp.ge.s32.totalorder %s1719_s24, 2 }
   0x8   : > { %p296_p5 = scmp.lt.s32.totalorder (!%p245_p3), %s1413_s19, 1  ;;  %p298_p6 = scmp.lt.s32.totalorder (!%p245_p3), %s1409_s18, 5 }
   0x9   : > { %s1721_s24 = smov (%p29_p4, %s1719_s24), 0  ;;  %248 = sbr.rel (%p245_p3) target bundleno = 451 (0x1c3), region = 40 }
   0xa   : > { %s304_s25 = sadd.s32 (!%p245_p3), 1, %s1409_s18  ;;  %s314_s28 = sadd.s32 (!%p245_p3), 2, %s1409_s18 }
   0xb   : > { %p307_p7 = scmp.lt.s32.totalorder (!%p245_p3), %s304_s25, 5  ;;  %p317_p8 = scmp.lt.s32.totalorder (!%p245_p3), %s314_s28, 5 }
   0xc   : > { %s1428_s9 = smov (!%p245_p3), 11   ;;  %s1433_s6 = smov (!%p245_p3), 127  }
   0xd   : > { %s1434_s7 = smov (!%p245_p3), 117   ;;  %p326_p9 = scmp.lt.s32.totalorder (!%p245_p3), %s1409_s18, 3 }
   0xe   : > { %vm365_vm0 = vcmask 994304   ;;  %v1427_v0 = vmov 0.0   ;;  %s1723_s19 = smov (!%p296_p5, %s1413_s19), 1  ;;  %s1725_s25 = smov (!%p307_p7, %s304_s25), 5  ;;  %vm372_vm1 = vcmask 904280   ;;  %vm379_vm2 = vcmask 1043456  }
   0xf   : > { %366 = vst.msk [vmem:[#allocation2] sm:$0xf] %vm365_vm0, %v1427_v0  ;;  %s299_s26 = scalar_select %p298_p6, %s1409_s18, 5  ;;  %v332_v10 = vld [vmem:[%s1709_s3] sm:$0xf]  ;;  %vm375_vm3 = vcmask 31744  }
  0x10   : > { %s1334_s27 = smul.u32 6, %s1723_s19  ;;  %s1727_s28 = smov (!%p317_p8, %s314_s28), 5  ;;  %v335_v12 = vld [vmem:[%s1709_s3 + $0xc] sm:$0xf]  ;;  %v333_v13 = vld [vmem:[%s1709_s3 + $0x4] sm:$0xf] }
  0x11   : > { %v1437_v15 = vmov 0   ;;  %v359_v16 = vld [vmem:[%s1710_s4] sm:$0xf]  ;;  %v339_v17 = vld [vmem:[%s1709_s3 + $0x1c] sm:$0xf]  ;;  %s1729_s18 = smov (!%p326_p9, %s1409_s18), 3 }
  0x12   : > { %s301_s29 = sadd.s32 %s1334_s27, %s299_s26  ;;  %s310_s10 = sadd.s32 %s1334_s27, %s1725_s25  ;;  %1386 = vset.pattern.permute.xlu0 %v1437_v15  ;;  %v334_v22 = vld [vmem:[%s1709_s3 + $0x8] sm:$0xf]  ;;  %v336_v25 = vld [vmem:[%s1709_s3 + $0x10] sm:$0xf]  ;;  %v337_v26 = vld [vmem:[%s1709_s3 + $0x14] sm:$0xf] }
  0x13   : > { %s1273_s30 = sshll.u32 %s301_s29, 2  ;;  %s1274_s11 = sshll.u32 %s310_s10, 2  ;;  %v338_v28 = vld [vmem:[%s1709_s3 + $0x18] sm:$0xf]  ;;  %v343_v29 = vld [vmem:[%s1709_s3 + $0x2c] sm:$0xf] }
  0x14   : > { %s303_s8 = scalar_lea.vmem %s1706_s0, %s1273_s30  ;;  %s320_s12 = sadd.s32 %s1334_s27, %s1727_s28  ;;  %v340_v32 = vld [vmem:[%s1709_s3 + $0x20] sm:$0xf]  ;;  %v341_v33 = vld [vmem:[%s1709_s3 + $0x24] sm:$0xf]  ;;  %v342_v35 = vld [vmem:[%s1709_s3 + $0x28] sm:$0xf] }
  0x15   : > { %v367_v1 = vld [vmem:[%s303_s8] sm:$0xf]  ;;  %s312_s15 = scalar_lea.vmem %s1707_s1, %s1274_s11  ;;  %s1275_s16 = sshll.u32 %s320_s12, 2  ;;  %v347_v36 = vld [vmem:[%s1709_s3 + $0x3c] sm:$0xf]  ;;  %vm1144_vm4 = vcmask 814080  }
  0x16   : > { %369 = vrot.lane.b32.xlu0 %v367_v1, %s1428_s9  ;;  %s322_s29 = scalar_lea.vmem %s1708_s2, %s1275_s16  ;;  %v628_v2 = vld [vmem:[%s312_s15] sm:$0xf]  ;;  %s1429_s25 = smov 108   ;;  %v344_v39 = vld [vmem:[%s1709_s3 + $0x30] sm:$0xf] }
  0x17   : > { %v886_v3 = vld [vmem:[%s322_s29] sm:$0xf]  ;;  %s1430_s27 = smov 118   ;;  %s1431_s28 = smov 126   ;;  %v346_v41 = vld [vmem:[%s1709_s3 + $0x38] sm:$0xf] }
  0x18   : > { %888 = vrot.lane.b32.xlu1 %v886_v3, %s1428_s9  ;;  %s1432_s30 = smov 116   ;;  %s1435_s8 = smov 107   ;;  %v351_v42 = vld [vmem:[%s1709_s3 + $0x4c] sm:$0xf]  ;;  %v345_v44 = vld [vmem:[%s1709_s3 + $0x34] sm:$0xf] }
  0x19   : > { %v348_v45 = vld [vmem:[%s1709_s3 + $0x40] sm:$0xf]  ;;  %v350_v47 = vld [vmem:[%s1709_s3 + $0x48] sm:$0xf]  ;;  %v352_v50 = vld [vmem:[%s1709_s3 + $0x50] sm:$0xf] }
  0x1a   : > { %v349_v52 = vld [vmem:[%s1709_s3 + $0x44] sm:$0xf]  ;;  %v354_v53 = vld [vmem:[%s1709_s3 + $0x58] sm:$0xf]  ;;  %v355_v56 = vld [vmem:[%s1709_s3 + $0x5c] sm:$0xf] }
  0x1b   : > { %v353_v58 = vld [vmem:[%s1709_s3 + $0x54] sm:$0xf]  ;;  %v358_v59 = vld [vmem:[%s1709_s3 + $0x68] sm:$0xf]  ;;  %v356_v60 = vld [vmem:[%s1709_s3 + $0x60] sm:$0xf] }
  0x1c   : > { %v357_v62 = vld [vmem:[%s1709_s3 + $0x64] sm:$0xf]  ;;  %s1276_s12 = sshll.u32 %s1723_s19, 2 }
  0x1d   : > { %s329_s13 = sadd.s32 %s1276_s12, %s1729_s18 }
  0x1e   : > { %630 = vrot.lane.b32.xlu0 %v628_v2, %s1428_s9  ;;  %s1436_s9 = smov 106   ;;  %s1277_s14 = sshll.u32 %s329_s13, 2 }
  0x1f   : > { %s331_s17 = scalar_lea.vmem %s1711_s5, %s1277_s14 }
  0x88   : > { %v370_v4 = vpop.permute.xlu0 %369 }
  0x89   : > { %373 = vst.msk [vmem:[#allocation2] sm:$0xf] %vm372_vm1, %v370_v4 }
  0x8a   : > { %v889_v7 = vpop.permute.xlu1 %888 }
  0x90   : > { %v374_v5 = vld [vmem:[#allocation2] sm:$0xf]  ;;  %v631_v6 = vpop.permute.xlu0 %630 }
  0x91   : > { %544 = vrot.lane.b32.xlu0 %v374_v5, %s1429_s25  ;;  %460 = vrot.lane.b32.xlu2 %v374_v5, %s1430_s27  ;;  %633 = vst.msk [vmem:[#allocation2] sm:$0xf] %vm372_vm1, %v631_v6 }
  0x92   : > { %432 = vrot.lane.b32.xlu1 %v374_v5, %s1431_s28  ;;  %1278 = vmatpush.msk.msra.mxu0 %vm379_vm2, %v374_v5 }
  0x93   : > { %1279 = vmatmul.msk.f32.vlgmr.msra.gmra.mxu0 %vm375_vm3, %v332_v10 }
  0x98   : > { %v1521_v8 = vld [vmem:[#allocation2] sm:$0xf] }
  0x99   : > { %516 = vrot.lane.b32.xlu0 %v374_v5, %s1432_s30  ;;  %404 = vrot.lane.b32.xlu2 %v374_v5, %s1433_s6  ;;  %891 = vst.msk [vmem:[#allocation2] sm:$0xf] %vm372_vm1, %v889_v7 }
  0x9a   : > { %488 = vrot.lane.b32.xlu1 %v374_v5, %s1434_s7 }
  0xa0   : > { %v1529_v9 = vld [vmem:[#allocation2] sm:$0xf] }
  0xa1   : > { %572 = vrot.lane.b32.xlu2 %v374_v5, %s1435_s8  ;;  %690 = vrot.lane.b32.xlu0 %v1521_v8, %s1431_s28 }
  0xa2   : > { %662 = vrot.lane.b32.xlu1 %v1521_v8, %s1433_s6 }
  0xa9   : > { %600 = vrot.lane.b32.xlu2 %v374_v5, %s1436_s9  ;;  %802 = vrot.lane.b32.xlu0 %v1521_v8, %s1429_s25 }
  0xaa   : > { %774 = vrot.lane.b32.xlu1 %v1521_v8, %s1432_s30 }
  0xb1   : > { %718 = vrot.lane.b32.xlu2 %v1521_v8, %s1430_s27  ;;  %920 = vrot.lane.b32.xlu0 %v1529_v9, %s1433_s6 }
  0xb2   : > { %746 = vrot.lane.b32.xlu1 %v1521_v8, %s1434_s7 }
  0xb9   : > { %830 = vrot.lane.b32.xlu2 %v1521_v8, %s1435_s8  ;;  %948 = vrot.lane.b32.xlu0 %v1529_v9, %s1431_s28 }
  0xba   : > { %858 = vrot.lane.b32.xlu1 %v1521_v8, %s1436_s9 }
  0xc1   : > { %1004 = vrot.lane.b32.xlu2 %v1529_v9, %s1434_s7  ;;  %1116 = vrot.lane.b32.xlu0 %v1529_v9, %s1436_s9 }
  0xc2   : > { %1032 = vrot.lane.b32.xlu1 %v1529_v9, %s1432_s30 }
  0xc9   : > { %976 = vrot.lane.b32.xlu2 %v1529_v9, %s1430_s27  ;;  %362 = vperm.xlu0 %1386, %v359_v16  }
  0xca   : > { %1060 = vrot.lane.b32.xlu1 %v1529_v9, %s1429_s25 }
  0xd1   : > { %1088 = vrot.lane.b32.xlu2 %v1529_v9, %s1435_s8 }
  0xeb   : > { %v461_v11 = vpop.permute.xlu2 %460 }
  0xec   : > { %1284 = vmatpush.msk.msra.mxu3 %vm379_vm2, %v461_v11 }
  0xed   : > { %1285 = vmatmul.msk.f32.vlgmr.msra.gmra.mxu3 %vm375_vm3, %v335_v12 }
  0xf3   : > { %v405_v14 = vpop.permute.xlu2 %404 }
  0xf4   : > { %1280 = vmatpush.msk.msra.mxu1 %vm379_vm2, %v405_v14 }
  0xf5   : > { %1281 = vmatmul.msk.f32.vlgmr.msra.gmra.mxu1 %vm375_vm3, %v333_v13 }
  0xfb   : > { %v573_v18 = vpop.permute.xlu2 %572 }
  0xfc   : > { %1292 = vmatpush.msk.msrb.mxu3 %vm379_vm2, %v573_v18 }
  0xfd   : > { %1293 = vmatmul.msk.f32.vlgmr.msrb.gmra.mxu3 %vm375_vm3, %v339_v17 }
 0x103   : > { %v601_v19 = vpop.permute.xlu2 %600  ;;  %v545_v20 = vpop.permute.xlu0 %544 }
 0x104   : > { %v433_v21 = vpop.permute.xlu1 %432 }
 0x105   : > { %1282 = vmatpush.msk.msra.mxu2 %vm379_vm2, %v433_v21 }
 0x106   : > { %1283 = vmatmul.msk.f32.vlgmr.msra.gmra.mxu2 %vm375_vm3, %v334_v22 }
 0x107   : > { %1290 = vmatpush.msk.msrb.mxu2 %vm379_vm2, %v545_v20 }
 0x10b   : > { %v719_v23 = vpop.permute.xlu2 %718  ;;  %v517_v24 = vpop.permute.xlu0 %516 }
 0x10c   : > { %v489_v27 = vpop.permute.xlu1 %488  ;;  %1288 = vmatpush.msk.msrb.mxu1 %vm379_vm2, %v517_v24 }
 0x10d   : > { %1286 = vmatpush.msk.msrb.mxu0 %vm379_vm2, %v489_v27  ;;  %1289 = vmatmul.msk.f32.vlgmr.msrb.gmra.mxu1 %vm375_vm3, %v337_v26 }
 0x10e   : > { %1296 = vmatpush.msk.msra.mxu1 %vm379_vm2, %v1521_v8  ;;  %1287 = vmatmul.msk.f32.vlgmr.msrb.gmra.mxu0 %vm375_vm3, %v336_v25 }
 0x10f   : > { %1294 = vmatpush.msk.msra.mxu0 %vm379_vm2, %v601_v19  ;;  %1291 = vmatmul.msk.f32.vlgmr.msrb.gmra.mxu2 %vm375_vm3, %v338_v28 }
 0x110   : > { %v400_v63 = vpop.f32.mrf.mxu0 }
 0x111   : > { %1302 = vmatpush.msk.msrb.mxu0 %vm379_vm2, %v719_v23 }
 0x113   : > { %v831_v30 = vpop.permute.xlu2 %830  ;;  %v691_v31 = vpop.permute.xlu0 %690 }
 0x114   : > { %v663_v34 = vpop.permute.xlu1 %662  ;;  %1300 = vmatpush.msk.msra.mxu3 %vm379_vm2, %v691_v31 }
 0x115   : > { %1298 = vmatpush.msk.msra.mxu2 %vm379_vm2, %v663_v34  ;;  %1301 = vmatmul.msk.f32.vlgmr.msra.gmra.mxu3 %vm375_vm3, %v343_v29 }
 0x116   : > { %1295 = vmatmul.msk.f32.vlgmr.msra.gmra.mxu0 %vm375_vm3, %v340_v32  ;;  %1297 = vmatmul.msk.f32.vlgmr.msra.gmra.mxu1 %vm375_vm3, %v341_v33 }
 0x117   : > { %1310 = vmatpush.msk.msra.mxu0 %vm379_vm2, %v831_v30  ;;  %1299 = vmatmul.msk.f32.vlgmr.msra.gmra.mxu2 %vm375_vm3, %v342_v35 }
 0x11b   : > { %v1005_v37 = vpop.permute.xlu2 %1004  ;;  %v803_v38 = vpop.permute.xlu0 %802 }
 0x11c   : > { %v775_v40 = vpop.permute.xlu1 %774  ;;  %1308 = vmatpush.msk.msrb.mxu3 %vm379_vm2, %v803_v38 }
 0x11d   : > { %1306 = vmatpush.msk.msrb.mxu2 %vm379_vm2, %v775_v40  ;;  %1309 = vmatmul.msk.f32.vlgmr.msrb.gmra.mxu3 %vm375_vm3, %v347_v36 }
 0x11e   : > { %1303 = vmatmul.msk.f32.vlgmr.msrb.gmra.mxu0 %vm375_vm3, %v344_v39 }
 0x11f   : > { %1314 = vmatpush.msk.msra.mxu2 %vm379_vm2, %v1529_v9 }
 0x120   : > { %1307 = vmatmul.msk.f32.vlgmr.msrb.gmra.mxu2 %vm375_vm3, %v346_v41 }
 0x121   : > { %1322 = vmatpush.msk.msrb.mxu2 %vm379_vm2, %v1005_v37 }
 0x123   : > { %v921_v43 = vpop.permute.xlu0 %920  ;;  %v977_v48 = vpop.permute.xlu2 %976 }
 0x124   : > { %v747_v46 = vpop.permute.xlu1 %746  ;;  %1316 = vmatpush.msk.msra.mxu3 %vm379_vm2, %v921_v43 }
 0x125   : > { %1304 = vmatpush.msk.msrb.mxu1 %vm379_vm2, %v747_v46  ;;  %1317 = vmatmul.msk.f32.vlgmr.msra.gmra.mxu3 %vm375_vm3, %v351_v42 }
 0x126   : > { %1305 = vmatmul.msk.f32.vlgmr.msrb.gmra.mxu1 %vm375_vm3, %v345_v44  ;;  %1311 = vmatmul.msk.f32.vlgmr.msra.gmra.mxu0 %vm375_vm3, %v348_v45 }
 0x128   : > { %1315 = vmatmul.msk.f32.vlgmr.msra.gmra.mxu2 %vm375_vm3, %v350_v47 }
 0x12b   : > { %v949_v49 = vpop.permute.xlu0 %948  ;;  %v1089_v54 = vpop.permute.xlu2 %1088 }
 0x12c   : > { %v859_v51 = vpop.permute.xlu1 %858  ;;  %1318 = vmatpush.msk.msrb.mxu0 %vm379_vm2, %v949_v49 }
 0x12d   : > { %1312 = vmatpush.msk.msra.mxu1 %vm379_vm2, %v859_v51 }
 0x12e   : > { %1319 = vmatmul.msk.f32.vlgmr.msrb.gmra.mxu0 %vm375_vm3, %v352_v50  ;;  %1313 = vmatmul.msk.f32.vlgmr.msra.gmra.mxu1 %vm375_vm3, %v349_v52 }
 0x12f   : > { %1320 = vmatpush.msk.msrb.mxu1 %vm379_vm2, %v977_v48 }
 0x130   : > { %1323 = vmatmul.msk.f32.vlgmr.msrb.gmra.mxu2 %vm375_vm3, %v354_v53 }
 0x131   : > { %1328 = vmatpush.msk.msra.mxu1 %vm379_vm2, %v1089_v54 }
 0x133   : > { %v1117_v55 = vpop.permute.xlu0 %1116 }
 0x134   : > { %v1033_v57 = vpop.permute.xlu1 %1032  ;;  %1330 = vmatpush.msk.msra.mxu2 %vm379_vm2, %v1117_v55 }
 0x135   : > { %1324 = vmatpush.msk.msrb.mxu3 %vm379_vm2, %v1033_v57 }
 0x136   : > { %1325 = vmatmul.msk.f32.vlgmr.msrb.gmra.mxu3 %vm375_vm3, %v355_v56  ;;  %1321 = vmatmul.msk.f32.vlgmr.msrb.gmra.mxu1 %vm375_vm3, %v353_v58 }
 0x138   : > { %1331 = vmatmul.msk.f32.vlgmr.msra.gmra.mxu2 %vm375_vm3, %v358_v59 }
 0x13b   : > { %v363_v0 = vpop.permute.xlu0 %362 }
 0x13c   : > { %v1061_v61 = vpop.permute.xlu1 %1060  ;;  %v403_v2 = vadd.f32 %v400_v63, %v363_v0 }
 0x13d   : > { %1326 = vmatpush.msk.msra.mxu0 %vm379_vm2, %v1061_v61 }
 0x13e   : > { %1327 = vmatmul.msk.f32.vlgmr.msra.gmra.mxu0 %vm375_vm3, %v356_v60  ;;  %1329 = vmatmul.msk.f32.vlgmr.msra.gmra.mxu1 %vm375_vm3, %v357_v62 }
 0x170   : > { %v484_v3 = vpop.f32.mrf.mxu3 }
 0x172   : > { %v428_v1 = vpop.f32.mrf.mxu1 }
 0x173   : > { %v431_v4 = vadd.f32 %v428_v1, %v403_v2 }
 0x180   : > { %v596_v11 = vpop.f32.mrf.mxu3 }
 0x189   : > { %v456_v5 = vpop.f32.mrf.mxu2 }
 0x18a   : > { %v459_v6 = vadd.f32 %v456_v5, %v431_v4  ;;  %v540_v8 = vpop.f32.mrf.mxu1 }
 0x18b   : > { %v512_v7 = vpop.f32.mrf.mxu0 }
 0x18c   : > { %v487_v9 = vadd.f32 %v484_v3, %v459_v6 }
 0x18e   : > { %v515_v10 = vadd.f32 %v512_v7, %v487_v9 }
 0x190   : > { %v543_v12 = vadd.f32 %v540_v8, %v515_v10 }
 0x192   : > { %v568_v13 = vpop.f32.mrf.mxu2 }
 0x193   : > { %v571_v14 = vadd.f32 %v568_v13, %v543_v12  ;;  %v624_v15 = vpop.f32.mrf.mxu0  ;;  %v658_v17 = vpop.f32.mrf.mxu1 }
 0x195   : > { %v599_v16 = vadd.f32 %v596_v11, %v571_v14 }
 0x197   : > { %v627_v18 = vadd.f32 %v624_v15, %v599_v16 }
 0x198   : > { %v714_v21 = vpop.f32.mrf.mxu3 }
 0x199   : > { %v661_v19 = vadd.f32 %v658_v17, %v627_v18 }
 0x19a   : > { %v686_v20 = vpop.f32.mrf.mxu2 }
 0x19b   : > { %v689_v22 = vadd.f32 %v686_v20, %v661_v19  ;;  %v742_v23 = vpop.f32.mrf.mxu0 }
 0x19d   : > { %v717_v24 = vadd.f32 %v714_v21, %v689_v22 }
 0x19f   : > { %v745_v25 = vadd.f32 %v742_v23, %v717_v24 }
 0x1a0   : > { %v826_v29 = vpop.f32.mrf.mxu3 }
 0x1a3   : > { %v798_v26 = vpop.f32.mrf.mxu2  ;;  %v770_v27 = vpop.f32.mrf.mxu1 }
 0x1a4   : > { %v773_v28 = vadd.f32 %v770_v27, %v745_v25  ;;  %v854_v31 = vpop.f32.mrf.mxu0 }
 0x1a6   : > { %v801_v30 = vadd.f32 %v798_v26, %v773_v28 }
 0x1a8   : > { %v829_v32 = vadd.f32 %v826_v29, %v801_v30  ;;  %v944_v37 = vpop.f32.mrf.mxu3 }
 0x1aa   : > { %v857_v33 = vadd.f32 %v854_v31, %v829_v32 }
 0x1ab   : > { %v916_v34 = vpop.f32.mrf.mxu2  ;;  %v882_v35 = vpop.f32.mrf.mxu1 }
 0x1ac   : > { %v885_v36 = vadd.f32 %v882_v35, %v857_v33  ;;  %v972_v39 = vpop.f32.mrf.mxu0 }
 0x1ae   : > { %v919_v38 = vadd.f32 %v916_v34, %v885_v36 }
 0x1b0   : > { %v947_v40 = vadd.f32 %v944_v37, %v919_v38 }
 0x1b2   : > { %v975_v41 = vadd.f32 %v972_v39, %v947_v40 }
 0x1b3   : > { %v1028_v42 = vpop.f32.mrf.mxu2  ;;  %v1000_v43 = vpop.f32.mrf.mxu1 }
 0x1b4   : > { %v1003_v44 = vadd.f32 %v1000_v43, %v975_v41 }
 0x1b6   : > { %v1031_v45 = vadd.f32 %v1028_v42, %v1003_v44 }
 0x1b9   : > { %v1056_v46 = vpop.f32.mrf.mxu3 }
 0x1ba   : > { %v1059_v47 = vadd.f32 %v1056_v46, %v1031_v45 }
 0x1bb   : > { %v1084_v48 = vpop.f32.mrf.mxu0  ;;  %v1112_v50 = vpop.f32.mrf.mxu1 }
 0x1bc   : > { %v1087_v49 = vadd.f32 %v1084_v48, %v1059_v47  ;;  %v1140_v51 = vpop.f32.mrf.mxu2 }
 0x1be   : > { %v1115_v52 = vadd.f32 %v1112_v50, %v1087_v49 }
 0x1c0   : > { %v1143_v53 = vadd.f32 %v1140_v51, %v1115_v52 }
 0x1c2   : > { %1145 = vst.msk [vmem:[%s331_s17] sm:$0xf] %vm1144_vm4, %v1143_v53 }
 0x1c3 PF: > { %s15_s22 = sadd.s32 1, %s1425_s22   ;;  %s1712_s18 = smov %s1417_s20 }
 0x1c4   : > { %p12_p10 = scmp.ge.s32.totalorder %s15_s22, 10   ;;  %s1713_s19 = smov %s1421_s21 }
 0x1c5   : > { %s1714_s20 = smov %s1717_s23  ;;  %s1715_s21 = smov %s1721_s24 }
 0x1c6   :  { %14 = sbr.rel (!%p12_p10) target bundleno = 3 (0x3), region = 76 }

</bundles_post_ra>
